<compile_context>
chip_gen: v7x
topology: tpu7x:2x2x1
jax: 0.10.0
libtpu: 0.0.40
codegen_flags: <defaults>
</compile_context>

<pallas_src>
import functools

import jax
import jax.numpy as jnp
from jax.experimental import pallas as pl
from jax.experimental.pallas import tpu as pltpu


# ---------------------------------------------------------------------------
# Kernel (single body; use_bn / inv_b are compile-time constants)
# ---------------------------------------------------------------------------
def _mlp_head_kernel(*refs, use_bn: bool, inv_b: float):
    if use_bn:
        (x_hbm, w1_ref, gamma_ref, beta_ref, w2_ref, b2_ref,
         o_ref, acc_ref, x_vmem, x_sem) = refs
    else:
        (x_hbm, w1_ref, b1_ref, w2_ref, b2_ref,
         o_ref, acc_ref, x_vmem, x_sem) = refs

    h_idx = pl.program_id(0)

    @pl.when(h_idx == 0)
    def _init():
        # Stage the constant-index activations once into VMEM (single buffer
        # instead of the auto-pipeline's double buffer), and zero the f32
        # Linear2 accumulator.
        cp = pltpu.make_async_copy(x_hbm, x_vmem, x_sem)
        cp.start()
        cp.wait()
        acc_ref[...] = jnp.zeros_like(acc_ref)

    # Linear1 for this hidden tile: (B_pad, tile_h), f32 accumulation on MXU.
    h = jnp.dot(x_vmem[...], w1_ref[...], preferred_element_type=jnp.float32)

    if use_bn:
        # Fused one-pass BatchNorm (batch statistics, biased var, eps=1e-5).
        # Linear1's bias cancels exactly under the batch-mean subtraction, so
        # it is dropped here; consequently zero-padded batch rows contribute
        # exactly 0 to both sums and dividing by the REAL batch size is exact.
        s1 = jnp.sum(h, axis=0, keepdims=True)
        s2 = jnp.sum(h * h, axis=0, keepdims=True)
        mean = s1 * inv_b
        var = jnp.maximum(s2 * inv_b - mean * mean, 0.0)
        scale = gamma_ref[...] * jax.lax.rsqrt(var + 1e-5)
        shift = beta_ref[...] - mean * scale
        h = h * scale + shift
    else:
        h = h + b1_ref[...]

    h = jnp.maximum(h, 0.0)

    # Partial Linear2 contribution of this hidden tile, accumulated in f32.
    acc_ref[...] += jnp.dot(h.astype(w2_ref.dtype), w2_ref[...],
                            preferred_element_type=jnp.float32)

    @pl.when(h_idx == pl.num_programs(0) - 1)
    def _finalize():
        o_ref[...] = (acc_ref[...] + b2_ref[...]).astype(o_ref.dtype)


# ---------------------------------------------------------------------------
# VMEM budgeting / tile selection
# ---------------------------------------------------------------------------
def _vmem_limit_bytes():
    fallback = 48 << 20  # safe on every generation (v7x: 64 MiB physical / TC)
    try:
        cap = int(pltpu.get_tpu_info().vmem_capacity_bytes)
    except Exception:
        return fallback
    return max(cap - (16 << 20), 32 << 20)  # headroom for pipeline internals


def _pick_hidden_tile(hidden, *, B_pad, in_dim, out_p, compute_itemsize,
                      out_itemsize, vmem_budget):
    """Largest hidden tile whose working set fits the VMEM budget."""
    fixed = (B_pad * in_dim * compute_itemsize        # staged x (single buffer)
             + B_pad * out_p * 4                      # f32 accumulator scratch
             + 2 * B_pad * out_p * out_itemsize       # output block (x2 bufs)
             + 2 * out_p * 4)                         # b2 (x2 bufs)
    candidates = [t for t in (2048, 1024, 512, 256, 128)
                  if t <= hidden and hidden % t == 0]
    for t in candidates:
        per_tile = (2 * in_dim * t * compute_itemsize     # W1 column tile x2
                    + 2 * t * out_p * compute_itemsize    # W2 row tile x2
                    + 2 * 2 * t * 4                       # gamma/beta (b1) x2
                    + 2 * B_pad * t * 4)                  # f32 BN temporaries
        if fixed + per_tile <= vmem_budget:
            return t
    # Tiny heads (hidden < 128 / no 128-divisor) -> single tile; otherwise the
    # smallest legal candidate.
    return candidates[-1] if candidates else hidden


# ---------------------------------------------------------------------------
# Wrapper
# ---------------------------------------------------------------------------
def mlp_head_forward(x, params, compute_dtype=jnp.bfloat16):
    """x: (B, in_dim). params: pre-transposed weights (x @ W layout), f32.

    compute_dtype=bf16 (default) is the right operating point on all
    generations (mandatory-in-practice on v5e: no fast f32 MXU path); the BN
    math and the matmul accumulation stay f32 regardless.
    """
    B, in_dim = x.shape
    w1, b1 = params["w1"], params["b1"]            # (in_dim, hidden), (1, hidden)
    gamma, beta = params["gamma"], params["beta"]  # (1, hidden), (1, hidden)
    w2, b2 = params["w2"], params["b2"]            # (hidden, out), (1, out)
    hidden = w1.shape[1]
    out_dim = w2.shape[1]
    out_dtype = x.dtype

    # Lane-dense output: pad out_dim to a multiple of 128 with zero columns
    # (unmasked full-lane stores); slice back after the call.
    out_p = max(128, ((out_dim + 127) // 128) * 128)
    if out_p != out_dim:
        w2 = jnp.pad(w2, ((0, 0), (0, out_p - out_dim)))
        b2 = jnp.pad(b2, ((0, 0), (0, out_p - out_dim)))

    cdt = jnp.dtype(compute_dtype)
    x_c = x.astype(cdt)
    w1_c = w1.astype(cdt)
    w2_c = w2.astype(cdt)

    # Sublane-align the batch (8 for f32 operands, 16 for bf16).  Exact under
    # BN because b1 is dropped there (zero rows contribute 0 to both sums and
    # the stats divide by the real B); padded output rows are sliced off.
    sub = 8 if cdt.itemsize >= 4 else 16
    B_pad = ((B + sub - 1) // sub) * sub
    if B_pad != B:
        x_c = jnp.pad(x_c, ((0, B_pad - B), (0, 0)))

    limit = _vmem_limit_bytes()
    tile_h = _pick_hidden_tile(
        hidden, B_pad=B_pad, in_dim=in_dim, out_p=out_p,
        compute_itemsize=cdt.itemsize,
        out_itemsize=jnp.dtype(out_dtype).itemsize,
        vmem_budget=max(limit - (4 << 20), 16 << 20))
    n_h = hidden // tile_h

    use_bn = B > 1
    kernel = functools.partial(_mlp_head_kernel, use_bn=use_bn, inv_b=1.0 / B)

    x_spec = pl.BlockSpec(memory_space=pl.ANY)            # staged manually once
    w1_spec = pl.BlockSpec((in_dim, tile_h), lambda h: (0, h))
    w2_spec = pl.BlockSpec((tile_h, out_p), lambda h: (h, 0))
    b2_spec = pl.BlockSpec((1, out_p), lambda h: (0, 0))
    vec_h_spec = pl.BlockSpec((1, tile_h), lambda h: (0, h))

    if use_bn:
        in_specs = [x_spec, w1_spec, vec_h_spec, vec_h_spec, w2_spec, b2_spec]
        operands = (x_c, w1_c, gamma, beta, w2_c, b2)
    else:
        in_specs = [x_spec, w1_spec, vec_h_spec, w2_spec, b2_spec]
        operands = (x_c, w1_c, b1, w2_c, b2)

    # Advisory cost for XLA scheduling around the custom call.
    flops = 2 * B_pad * hidden * (in_dim + out_p)
    bytes_accessed = (x_c.size * x_c.dtype.itemsize
                      + w1_c.size * w1_c.dtype.itemsize
                      + w2_c.size * w2_c.dtype.itemsize
                      + B_pad * out_p * jnp.dtype(out_dtype).itemsize
                      + (4 * hidden + out_p) * 4)
    cost = pl.CostEstimate(flops=int(flops), transcendentals=int(hidden),
                           bytes_accessed=int(bytes_accessed))

    out_padded = pl.pallas_call(
        kernel,
        out_shape=jax.ShapeDtypeStruct((B_pad, out_p), out_dtype),
        grid=(n_h,),
        in_specs=in_specs,
        out_specs=pl.BlockSpec((B_pad, out_p), lambda h: (0, 0)),
        scratch_shapes=[
            pltpu.VMEM((B_pad, out_p), jnp.float32),   # Linear2 f32 accumulator
            pltpu.VMEM((B_pad, in_dim), cdt),          # staged activations (x)
            pltpu.SemaphoreType.DMA,                   # one-shot x DMA
        ],
        compiler_params=pltpu.CompilerParams(
            # Hidden axis is a reduction feeding the VMEM accumulator, so it
            # must stay sequential.  TODO(synk): v7x megacore split (2 TCs)
            # needs per-core partial accumulators + a final sum.
            dimension_semantics=("arbitrary",),
            vmem_limit_bytes=limit),
        cost_estimate=cost,
    )(*operands)

    return out_padded[:B, :out_dim]


# ---------------------------------------------------------------------------
# Pure-JAX reference (module semantics)
# ---------------------------------------------------------------------------
def mlp_head_reference(x, params, compute_dtype=jnp.float32):
    cd = compute_dtype
    h = jnp.dot(x.astype(cd), params["w1"].astype(cd),
                preferred_element_type=jnp.float32)
    h = h + params["b1"]
    if x.shape[0] > 1:
        mean = jnp.mean(h, axis=0, keepdims=True)
        var = jnp.mean((h - mean) ** 2, axis=0, keepdims=True)
        h = (h - mean) * jax.lax.rsqrt(var + 1e-5) * params["gamma"] + params["beta"]
    h = jnp.maximum(h, 0.0)
    y = jnp.dot(h.astype(cd), params["w2"].astype(cd),
                preferred_element_type=jnp.float32) + params["b2"]
    return y.astype(x.dtype)


# ---------------------------------------------------------------------------
# Main
# ---------------------------------------------------------------------------
if __name__ == "__main__":
    # Small shapes consistent with MLPHead(in_dim, hidden_dim, out_dim).
    B, IN_DIM, HIDDEN, OUT_DIM = 8, 32, 64, 16

    key = jax.random.PRNGKey(0)
    kx, k1, kb1, k2, kb2 = jax.random.split(key, 5)

    x = jax.random.normal(kx, (B, IN_DIM), dtype=jnp.float32)

    params = {
        "w1":    jax.random.normal(k1, (IN_DIM, HIDDEN), dtype=jnp.float32) * 0.1,
        "b1":    jax.random.normal(kb1, (1, HIDDEN), dtype=jnp.float32) * 0.01,
        "gamma": jnp.ones((1, HIDDEN), dtype=jnp.float32),
        "beta":  jnp.zeros((1, HIDDEN), dtype=jnp.float32),
        "w2":    jax.random.normal(k2, (HIDDEN, OUT_DIM), dtype=jnp.float32) * 0.1,
        "b2":    jax.random.normal(kb2, (1, OUT_DIM), dtype=jnp.float32) * 0.01,
    }

    ref_f32 = mlp_head_reference(x, params, compute_dtype=jnp.float32)

    # bf16-operand fast path (recommended on all generations).
    out_bf16 = jax.block_until_ready(
        mlp_head_forward(x, params, compute_dtype=jnp.bfloat16))
    assert out_bf16.shape == (B, OUT_DIM)
    assert jnp.allclose(out_bf16, ref_f32, atol=5e-2, rtol=5e-2), \
        "bf16 kernel diverged from module semantics"

    # f32 path: tight check against the pure-f32 reference.
    out_f32 = jax.block_until_ready(
        mlp_head_forward(x, params, compute_dtype=jnp.float32))
    assert jnp.allclose(out_f32, ref_f32, atol=2e-3, rtol=2e-3), \
        "f32 kernel mismatch vs reference"

    # Odd batch (not a sublane multiple): padded rows must not contaminate BN.
    x5 = x[:5]
    out5 = jax.block_until_ready(
        mlp_head_forward(x5, params, compute_dtype=jnp.float32))
    ref5 = mlp_head_reference(x5, params, compute_dtype=jnp.float32)
    assert jnp.allclose(out5, ref5, atol=2e-3, rtol=2e-3), "odd-batch mismatch"

    # batch == 1 branch (BatchNorm skipped, exactly as the module's forward).
    x1 = x[:1]
    out1 = jax.block_until_ready(
        mlp_head_forward(x1, params, compute_dtype=jnp.float32))
    ref1 = mlp_head_reference(x1, params, compute_dtype=jnp.float32)
    assert jnp.allclose(out1, ref1, atol=2e-3, rtol=2e-3), "batch==1 mismatch"

    print("KERNEL_OK")
</pallas_src>

<mosaic_0001>
module attributes {stable_mosaic.version = 11 : i64} {
  func.func @_mlp_head_kernel(%arg0: i32, %arg1: memref<16x32xbf16, #tpu.memory_space<any>>, %arg2: memref<32x64xbf16, #tpu.memory_space<vmem>>, %arg3: memref<1x64xf32, #tpu.memory_space<vmem>>, %arg4: memref<1x64xf32, #tpu.memory_space<vmem>>, %arg5: memref<64x128xbf16, #tpu.memory_space<vmem>>, %arg6: memref<1x128xf32, #tpu.memory_space<vmem>>, %arg7: memref<16x128xf32, #tpu.memory_space<vmem>>, %arg8: memref<16x128xf32, #tpu.memory_space<vmem>>, %arg9: memref<16x32xbf16, #tpu.memory_space<vmem>>, %arg10: memref<!tpu.dma_semaphore, #tpu.memory_space<semaphore_mem>>) attributes {dimension_semantics = [#tpu.dimension_semantics<arbitrary>], iteration_bounds = array<i64: 1>, scalar_prefetch = 0 : i64, scratch_operands = 3 : i64, tpu.core_type = #tpu.core_type<tc>, window_params = [{}, {transform_indices = @transform_1, window_bounds = array<i64: 32, 64>}, {transform_indices = @transform_2, window_bounds = array<i64: 1, 64>}, {transform_indices = @transform_3, window_bounds = array<i64: 1, 64>}, {transform_indices = @transform_4, window_bounds = array<i64: 64, 128>}, {pipeline_mode = #tpu.pipeline_mode<synchronous>, transform_indices = @transform_5, window_bounds = array<i64: 1, 128>}, {pipeline_mode = #tpu.pipeline_mode<synchronous>, transform_indices = @transform_6, window_bounds = array<i64: 16, 128>}]} {
    %c0_i32 = arith.constant 0 : i32
    %0 = arith.cmpi eq, %arg0, %c0_i32 : i32
    %1 = arith.extui %0 : i1 to i32
    %c0_i32_0 = arith.constant 0 : i32
    %2 = arith.cmpi ne, %1, %c0_i32_0 : i32
    scf.if %2 {
      tpu.enqueue_dma source(%arg1 : memref<16x32xbf16, #tpu.memory_space<any>>) target(%arg9 : memref<16x32xbf16, #tpu.memory_space<vmem>>) target_semaphore(%arg10 : memref<!tpu.dma_semaphore, #tpu.memory_space<semaphore_mem>>)
      tpu.wait_dma2 semaphore(%arg10 : memref<!tpu.dma_semaphore, #tpu.memory_space<semaphore_mem>>) src(%arg1 : memref<16x32xbf16, #tpu.memory_space<any>>) dst(%arg9 : memref<16x32xbf16, #tpu.memory_space<vmem>>)
      %cst_24 = arith.constant 0.000000e+00 : f32
      %42 = vector.broadcast %cst_24 : f32 to vector<16x128xf32>
      %c0_25 = arith.constant 0 : index
      %c0_26 = arith.constant 0 : index
      %43 = vector.load %arg8[%c0_25, %c0_26] : memref<16x128xf32, #tpu.memory_space<vmem>>, vector<16x128xf32>
      tpu.vector_store %arg8[%c0_25, %c0_26], %42 {strides = array<i32>} : memref<16x128xf32, #tpu.memory_space<vmem>>, vector<16x128xf32>,
    } else {
    }
    %c0 = arith.constant 0 : index
    %c0_1 = arith.constant 0 : index
    %3 = vector.load %arg9[%c0, %c0_1] : memref<16x32xbf16, #tpu.memory_space<vmem>>, vector<16x32xbf16>
    %c0_2 = arith.constant 0 : index
    %c0_3 = arith.constant 0 : index
    %4 = vector.load %arg2[%c0_2, %c0_3] : memref<32x64xbf16, #tpu.memory_space<vmem>>, vector<32x64xbf16>
    %cst = arith.constant dense<0.000000e+00> : vector<16x64xf32>
    %5 = tpu.matmul %3, %4, %cst {dimension_numbers = #tpu.dot_dimension_numbers<[1], [0], [0], [1], [0, 0, 1, 1], [], []>} : vector<16x32xbf16>, vector<32x64xbf16>, vector<16x64xf32> -> vector<16x64xf32>
    %cst_4 = arith.constant dense<0.000000e+00> : vector<64xf32>
    %6 = vector.multi_reduction <add>, %5, %cst_4 [0] : vector<16x64xf32> to vector<64xf32>
    %7 = vector.shape_cast %6 : vector<64xf32> to vector<1x64xf32>
    %8 = arith.mulf %5, %5 : vector<16x64xf32>
    %cst_5 = arith.constant dense<0.000000e+00> : vector<64xf32>
    %9 = vector.multi_reduction <add>, %8, %cst_5 [0] : vector<16x64xf32> to vector<64xf32>
    %10 = vector.shape_cast %9 : vector<64xf32> to vector<1x64xf32>
    %cst_6 = arith.constant 1.250000e-01 : f32
    %11 = vector.broadcast %cst_6 : f32 to vector<1x64xf32>
    %12 = arith.mulf %7, %11 : vector<1x64xf32>
    %cst_7 = arith.constant 1.250000e-01 : f32
    %13 = vector.broadcast %cst_7 : f32 to vector<1x64xf32>
    %14 = arith.mulf %10, %13 : vector<1x64xf32>
    %15 = arith.mulf %12, %12 : vector<1x64xf32>
    %16 = arith.subf %14, %15 : vector<1x64xf32>
    %cst_8 = arith.constant 0.000000e+00 : f32
    %17 = vector.broadcast %cst_8 : f32 to vector<1x64xf32>
    %18 = arith.maximumf %16, %17 : vector<1x64xf32>
    %c0_9 = arith.constant 0 : index
    %c0_10 = arith.constant 0 : index
    %19 = vector.load %arg3[%c0_9, %c0_10] : memref<1x64xf32, #tpu.memory_space<vmem>>, vector<1x64xf32>
    %cst_11 = arith.constant 9.99999974E-6 : f32
    %20 = vector.broadcast %cst_11 : f32 to vector<1x64xf32>
    %21 = arith.addf %18, %20 : vector<1x64xf32>
    %22 = math.rsqrt %21 : vector<1x64xf32>
    %23 = arith.mulf %19, %22 : vector<1x64xf32>
    %c0_12 = arith.constant 0 : index
    %c0_13 = arith.constant 0 : index
    %24 = vector.load %arg4[%c0_12, %c0_13] : memref<1x64xf32, #tpu.memory_space<vmem>>, vector<1x64xf32>
    %25 = arith.mulf %12, %23 : vector<1x64xf32>
    %26 = arith.subf %24, %25 : vector<1x64xf32>
    %27 = vector.broadcast %23 : vector<1x64xf32> to vector<16x64xf32>
    %28 = arith.mulf %5, %27 : vector<16x64xf32>
    %29 = vector.broadcast %26 : vector<1x64xf32> to vector<16x64xf32>
    %30 = arith.addf %28, %29 : vector<16x64xf32>
    %cst_14 = arith.constant 0.000000e+00 : f32
    %31 = vector.broadcast %cst_14 : f32 to vector<16x64xf32>
    %32 = arith.maximumf %30, %31 : vector<16x64xf32>
    %c0_15 = arith.constant 0 : index
    %c0_16 = arith.constant 0 : index
    %33 = vector.load %arg8[%c0_15, %c0_16] : memref<16x128xf32, #tpu.memory_space<vmem>>, vector<16x128xf32>
    %34 = arith.truncf %32 : vector<16x64xf32> to vector<16x64xbf16>
    %c0_17 = arith.constant 0 : index
    %c0_18 = arith.constant 0 : index
    %35 = vector.load %arg5[%c0_17, %c0_18] : memref<64x128xbf16, #tpu.memory_space<vmem>>, vector<64x128xbf16>
    %cst_19 = arith.constant dense<0.000000e+00> : vector<16x128xf32>
    %36 = tpu.matmul %34, %35, %cst_19 {dimension_numbers = #tpu.dot_dimension_numbers<[1], [0], [0], [1], [0, 0, 1, 1], [], []>} : vector<16x64xbf16>, vector<64x128xbf16>, vector<16x128xf32> -> vector<16x128xf32>
    %37 = arith.addf %33, %36 : vector<16x128xf32>
    %c0_20 = arith.constant 0 : index
    %c0_21 = arith.constant 0 : index
    %38 = vector.load %arg8[%c0_20, %c0_21] : memref<16x128xf32, #tpu.memory_space<vmem>>, vector<16x128xf32>
    tpu.vector_store %arg8[%c0_20, %c0_21], %37 {strides = array<i32>} : memref<16x128xf32, #tpu.memory_space<vmem>>, vector<16x128xf32>,
    %c0_i32_22 = arith.constant 0 : i32
    %39 = arith.cmpi eq, %arg0, %c0_i32_22 : i32
    %40 = arith.extui %39 : i1 to i32
    %c0_i32_23 = arith.constant 0 : i32
    %41 = arith.cmpi ne, %40, %c0_i32_23 : i32
    scf.if %41 {
      %c0_24 = arith.constant 0 : index
      %c0_25 = arith.constant 0 : index
      %42 = vector.load %arg8[%c0_24, %c0_25] : memref<16x128xf32, #tpu.memory_space<vmem>>, vector<16x128xf32>
      %c0_26 = arith.constant 0 : index
      %c0_27 = arith.constant 0 : index
      %43 = vector.load %arg6[%c0_26, %c0_27] : memref<1x128xf32, #tpu.memory_space<vmem>>, vector<1x128xf32>
      %44 = vector.broadcast %43 : vector<1x128xf32> to vector<16x128xf32>
      %45 = arith.addf %42, %44 : vector<16x128xf32>
      %c0_28 = arith.constant 0 : index
      %c0_29 = arith.constant 0 : index
      %46 = vector.load %arg7[%c0_28, %c0_29] : memref<16x128xf32, #tpu.memory_space<vmem>>, vector<16x128xf32>
      tpu.vector_store %arg7[%c0_28, %c0_29], %45 {strides = array<i32>} : memref<16x128xf32, #tpu.memory_space<vmem>>, vector<16x128xf32>,
    } else {
    }
    return
  }
  func.func @transform_1(%arg0: i32) -> (i32, i32) {
    %c0_i32 = arith.constant 0 : i32
    %c0_i32_0 = arith.constant 0 : i32
    return %c0_i32, %arg0 : i32, i32
  }
  func.func @transform_2(%arg0: i32) -> (i32, i32) {
    %c0_i32 = arith.constant 0 : i32
    %c0_i32_0 = arith.constant 0 : i32
    return %c0_i32, %arg0 : i32, i32
  }
  func.func @transform_3(%arg0: i32) -> (i32, i32) {
    %c0_i32 = arith.constant 0 : i32
    %c0_i32_0 = arith.constant 0 : i32
    return %c0_i32, %arg0 : i32, i32
  }
  func.func @transform_4(%arg0: i32) -> (i32, i32) {
    %c0_i32 = arith.constant 0 : i32
    %c0_i32_0 = arith.constant 0 : i32
    return %arg0, %c0_i32 : i32, i32
  }
  func.func @transform_5(%arg0: i32) -> (i32, i32) {
    %c0_i32 = arith.constant 0 : i32
    %c0_i32_0 = arith.constant 0 : i32
    %c0_i32_1 = arith.constant 0 : i32
    return %c0_i32, %c0_i32_0 : i32, i32
  }
  func.func @transform_6(%arg0: i32) -> (i32, i32) {
    %c0_i32 = arith.constant 0 : i32
    %c0_i32_0 = arith.constant 0 : i32
    %c0_i32_1 = arith.constant 0 : i32
    return %c0_i32, %c0_i32_0 : i32, i32
  }
}

</mosaic_0001>

<bundles_post_ra>
// kernel: tpu_custom_call.1
= control target key start
LH: loop header
LB: loop body
LE: loop exit
PB: predicated region body
PF: predicated region fallthrough
CT: control target
= control target key end

     0   :  { %11 = vsyncpa [#allocation6], 0  ;;  %s567_s0 = inlined_call_operand.hbm [shape: bf16[16,32], index: 0, kind: input, shape index: {}]   ;;  %s568_s1 = inlined_call_operand.hbm [shape: bf16[32,64], index: 1, kind: input, shape index: {}]   ;;  %s569_s2 = inlined_call_operand.vmem [shape: f32[1,64], index: 2, kind: input, shape index: {}]   ;;  %s570_s3 = inlined_call_operand.vmem [shape: f32[1,64], index: 3, kind: input, shape index: {}]   ;;  %s571_s4 = inlined_call_operand.hbm [shape: bf16[64,128], index: 4, kind: input, shape index: {}]   ;;  %s572_s5 = inlined_call_operand.vmem [shape: f32[1,128], index: 5, kind: input, shape index: {}]   ;;  %s573_s6 = inlined_call_operand.hbm [shape: f32[16,128], index: 6, kind: output, shape index: {}]  }
   0x1   :  { %12 = vsyncpa [#allocation9], 0 }
   0x2   :  { %13 = vsyncpa [#allocation7], 0  ;;  %s460_s21 = smov [#allocation5]   ;;  %s364_s25 = scalar_lea.hbm %s568_s1, 256 }
   0x3   :  { %s19_s22 = sshll.u32 %s460_s21, 4  ;;  %p365_p0 = scmp.ne.s32.totalorder %s568_s1, %s364_s25  ;;  %s20_s22 = int_to_ptr.vmem [resolvable:$true] %s19_s22 }
   0x4   :  { %p368_p1 = scmp.lt.u32.totalorder %s364_s25, %s568_s1 }
   0x6   :  { %p370_p2 = pnand %p368_p1, %p365_p0 }
   0x8   :  { %373 = shalt.err (!%p370_p2)
}
   0x9   :  { %s374_s30 = scalar_lea.vmem %s20_s22, 256  ;;  %p379_p4 = scmp.lt.s32.totalorder %s20_s22, %s20_s22 }
   0xa   :  { %p375_p3 = scmp.ne.s32.totalorder %s20_s22, %s374_s30  ;;  %p380_p5 = scmp.lt.s32.totalorder %s374_s30, %s374_s30 }
   0xc   :  { %p381_p6 = por %p380_p5, %p379_p4 }
   0xe   :  { %p382_p7 = pnand %p381_p6, %p375_p3 }
  0x10   :  { %385 = shalt.err (!%p382_p7)
}
  0x11   :  { %s461_s7 = smov 64   ;;  %s462_s8 = smov 4  }
  0x12   :  { %25 = dma.hbm_to_vmem [thread:$0]  %s568_s1, 256, %s20_s22, [#allocation6], %s461_s7, %s461_s7, %s462_s8  }
  0x13   :  { %s463_s11 = smov [#allocation8]   ;;  %s386_s15 = scalar_lea.hbm %s571_s4, 512 }
  0x14   :  { %s35_s12 = sshll.u32 %s463_s11, 4  ;;  %p387_p8 = scmp.ne.s32.totalorder %s571_s4, %s386_s15  ;;  %s36_s12 = int_to_ptr.vmem [resolvable:$true] %s35_s12 }
  0x15   :  { %p390_p9 = scmp.lt.u32.totalorder %s386_s15, %s571_s4 }
  0x17   :  { %p392_p10 = pnand %p390_p9, %p387_p8 }
  0x19   :  { %395 = shalt.err (!%p392_p10)
}
  0x1a   :  { %s396_s20 = scalar_lea.vmem %s36_s12, 512  ;;  %p401_p12 = scmp.lt.s32.totalorder %s36_s12, %s36_s12 }
  0x1b   :  { %p397_p11 = scmp.ne.s32.totalorder %s36_s12, %s396_s20  ;;  %p402_p13 = scmp.lt.s32.totalorder %s396_s20, %s396_s20 }
  0x1d   :  { %p403_p0 = por %p402_p13, %p401_p12 }
  0x1f   :  { %p404_p1 = pnand %p403_p0, %p397_p11 }
  0x21   :  { %407 = shalt.err (!%p404_p1)
}
  0x22   :  { %41 = dma.hbm_to_vmem [thread:$0]  %s571_s4, 512, %s36_s12, [#allocation9], %s461_s7, %s461_s7, %s462_s8  }
  0x23   :  { %452 = dma.done.wait [#allocation6], 256  }
  0x24   :  { %453 = vsyncadd [#allocation6], 4294967040 }
  0x25   :  { %454 = dma.done.wait [#allocation9], 512  }
  0x26   :  { %455 = vsyncadd [#allocation9], 4294966784  ;;  %s464_s22 = smov [#allocation3]   ;;  %s408_s26 = scalar_lea.hbm %s567_s0, 128 }
  0x27   :  { %s62_s23 = sshll.u32 %s464_s22, 4  ;;  %p409_p2 = scmp.ne.s32.totalorder %s567_s0, %s408_s26  ;;  %s63_s23 = int_to_ptr.vmem [resolvable:$true] %s62_s23 }
  0x28   :  { %p412_p3 = scmp.lt.u32.totalorder %s408_s26, %s567_s0 }
  0x2a   :  { %p414_p4 = pnand %p412_p3, %p409_p2 }
  0x2c   :  { %417 = shalt.err (!%p414_p4)  }
  0x2d   :  { %s418_s4 = scalar_lea.vmem %s63_s23, 128  ;;  %p423_p6 = scmp.lt.s32.totalorder %s63_s23, %s63_s23 }
  0x2e   :  { %p419_p5 = scmp.ne.s32.totalorder %s63_s23, %s418_s4  ;;  %p424_p7 = scmp.lt.s32.totalorder %s418_s4, %s418_s4 }
  0x30   :  { %p425_p8 = por %p424_p7, %p423_p6 }
  0x32   :  { %p426_p9 = pnand %p425_p8, %p419_p5 }
  0x34   :  { %429 = shalt.err (!%p426_p9)  }
  0x35   :  { %65 = dma.hbm_to_vmem [thread:$0]  %s567_s0, 128, %s63_s23, [#allocation4] }
  0x36   :  { %456 = dma.done.wait [#allocation4], 128 }
  0x37   :  { %457 = vsyncadd [#allocation4], 4294967168  ;;  %v465_v0 = vmov 0.0   ;;  %vm466_vm0 = vmmov 0   ;;  %v356_v1 = vld [vmem:[#allocation5] sm:$0xff]   ;;  %v357_v2 = vld [vmem:[#allocation5 + $0x8] sm:$0xff]   ;;  %v168_v38 = vlaneseq }
  0x38   :  { %326 = vmatprep.subr.bf16.mxu0 %v465_v0  ;;  %330 = vmatprep.mubr.msk.bf16.mxu0 %vm466_vm0, %v465_v0  ;;  %v72_v3 = vld [vmem:[#allocation3] sm:$0xff]  ;;  %vm89_vm1 = vcmask 261120   ;;  %v358_v4 = vld [vmem:[#allocation8] sm:$0xff]   ;;  %v360_v6 = vld [vmem:[#allocation8 + $0x10] sm:$0xff]   ;;  %vm134_vm2 = vcmask 523264   ;;  %s467_s13 = smov [#allocation10]  }
  0x39   :  { %334 = vmatprep.subr.bf16.mxu1 %v465_v0  ;;  %342 = vmatprep.mubr.msk.bf16.mxu1 %vm466_vm0, %v465_v0  ;;  %v359_v5 = vld [vmem:[#allocation8 + $0x8] sm:$0xff]   ;;  %v361_v7 = vld [vmem:[#allocation8 + $0x18] sm:$0xff]   ;;  %v169_v39 = vshrl.u32 %v168_v38, 7  ;;  %s289_s14 = sshll.u32 %s467_s13, 4  ;;  %s290_s14 = int_to_ptr.vmem [resolvable:$true] %s289_s14 }
  0x3a   :  { %327 = vmatpush3.bf16.msra.mxu0 %v356_v1  ;;  %335 = vmatpush3.bf16.msra.mxu1 %v358_v4  ;;  %v160_v40 = vld [vmem:[%s569_s2] sm:$0x1]  ;;  %p435_p11 = scmp.lt.s32.totalorder %s290_s14, %s290_s14 }
  0x3b   :  { %328 = vmatprep.subr.bf16.mxu0 %v465_v0  ;;  %336 = vmatprep.subr.bf16.mxu1 %v465_v0  ;;  %v170_v41 = vsub.s32 0, %v169_v39  ;;  %v164_v44 = vld [vmem:[%s570_s3] sm:$0x1]  ;;  %s430_s3 = scalar_lea.vmem %s290_s14, 256 }
  0x3c   :  { %v316_v56 = vld [vmem:[%s572_s5] ss:$0 sm:$0xff]  ;;  %p431_p10 = scmp.ne.s32.totalorder %s290_s14, %s430_s3  ;;  %p436_p12 = scmp.lt.s32.totalorder %s430_s3, %s430_s3 }
  0x3e   :  { %329 = vmatpush3.bf16.msra.mxu0 %v357_v2  ;;  %337 = vmatpush3.bf16.msra.mxu1 %v359_v5  ;;  %p437_p13 = por %p436_p12, %p435_p11 }
  0x3f   :  { %338 = vmatprep.subr.bf16.mxu1 %v465_v0 }
  0x40   :  { %p438_p0 = pnand %p437_p13, %p431_p10 }
  0x41   :  { %331 = vmatmul.mubr.msk.bf16.vlgmr.msra.gmra.mrb[0].mxu0 %vm89_vm1, %v72_v3 }
  0x42   :  { %339 = vmatpush3.bf16.msra.mxu1 %v360_v6 }
  0x43   :  { %340 = vmatprep.subr.bf16.mxu1 %v465_v0 }
  0x46   :  { %341 = vmatpush3.bf16.msra.mxu1 %v361_v7 }
 0x114   :  { %v127_v8 = vpop.f32.mrb[0].mxu0 }
 0x115   :  { %v144_v9 = vmul.f32 %v127_v8, %v127_v8  ;;  %v332_v10 = vpop.f32.mrb[1].mxu0  ;;  %v135_v12 = vsel %vm134_vm2, %v127_v8, 0.0 }
 0x116   :  { %v130_v11 = vpop.f32.mrb[2].mxu0 }
 0x117   :  { %v136_v13 = vsel %vm134_vm2, %v130_v11, 0.0  ;;  %v145_v14 = vmul.f32 %v130_v11, %v130_v11  ;;  %v333_v15 = vpop.f32.mrb[3].mxu0  ;;  %v146_v17 = vsel %vm134_vm2, %v144_v9, 0.0 }
 0x118   :  { %v137_v16 = vadd.f32 %v136_v13, %v135_v12 }
 0x119   :  { %v147_v18 = vsel %vm134_vm2, %v145_v14, 0.0 }
 0x11a   :  { %v138_v19 = vrot.slane %v137_v16, 4  ;;  %v148_v20 = vadd.f32 %v147_v18, %v146_v17 }
 0x11c   :  { %v139_v21 = vadd.f32 %v138_v19, %v137_v16  ;;  %v149_v22 = vrot.slane %v148_v20, 4 }
 0x11e   :  { %v140_v23 = vrot.slane %v139_v21, 2  ;;  %v150_v24 = vadd.f32 %v149_v22, %v148_v20 }
 0x120   :  { %v141_v25 = vadd.f32 %v140_v23, %v139_v21  ;;  %v151_v26 = vrot.slane %v150_v24, 2 }
 0x122   :  { %v142_v27 = vrot.slane %v141_v25, 1  ;;  %v152_v28 = vadd.f32 %v151_v26, %v150_v24 }
 0x124   :  { %v143_v29 = vadd.f32 %v142_v27, %v141_v25  ;;  %v153_v30 = vrot.slane %v152_v28, 1 }
 0x126   :  { %v154_v31 = vadd.f32 %v153_v30, %v152_v28  ;;  %v155_v32 = vmul.f32 0.125, %v143_v29 }
 0x128   :  { %v156_v33 = vmul.f32 0.125, %v154_v31  ;;  %v157_v34 = vmul.f32 %v155_v32, %v155_v32 }
 0x12a   :  { %v158_v35 = vsub.f32 %v156_v33, %v157_v34 }
 0x12c   :  { %v159_v36 = vmax.f32 %v158_v35, 0.0 }
 0x12e   :  { %v161_v37 = vadd.f32 1e-05, %v159_v36 }
 0x130   :  { %362 = vrsqrt.f32 %v161_v37 }
 0x13a   :  { %v363_v42 = vpop.eup %362 }
 0x13b   :  { %v163_v43 = vmul.f32 %v363_v42, %v160_v40 }
 0x13d   :  { %v165_v45 = vmul.f32 %v163_v43, %v155_v32  ;;  %v171_v46 = vrot.slane %v163_v43, %v170_v41 }
 0x13f   :  { %v166_v47 = vsub.f32 %v164_v44, %v165_v45  ;;  %v173_v48 = vmul.f32 %v171_v46, %v127_v8  ;;  %v174_v49 = vmul.f32 %v171_v46, %v130_v11 }
 0x141   :  { %v179_v50 = vrot.slane %v166_v47, %v170_v41 }
 0x143   :  { %v181_v51 = vadd.f32 %v179_v50, %v173_v48  ;;  %v182_v52 = vadd.f32 %v179_v50, %v174_v49 }
 0x145   :  { %v184_v53 = vmax.f32 %v182_v52, 0.0  ;;  %v183_v54 = vmax.f32 %v181_v51, 0.0 }
 0x147   :  { %v187_v55 = vpack.c.bf16 %v184_v53, %v183_v54 }
 0x149   :  { %343 = vmatmul.mubr.msk.bf16.vlgmr.msra.gmra.mrb[0].mxu1 %vm134_vm2, %v187_v55 }
 0x21c   :  { %v257_v57 = vpop.f32.mrb[0].mxu1 }
 0x21d   :  { %v280_v58 = vadd.f32 %v316_v56, %v257_v57  ;;  %v344_v59 = vpop.f32.mrb[1].mxu1 }
 0x21e   :  { %v260_v60 = vpop.f32.mrb[2].mxu1 }
 0x21f   :  { %282 = vst [vmem:[#allocation10] sm:$0xff] %v280_v58  ;;  %v281_v61 = vadd.f32 %v316_v56, %v260_v60  ;;  %v345_v62 = vpop.f32.mrb[3].mxu1 }
 0x221   :  { %283 = vst [vmem:[#allocation10 + $0x8] sm:$0xff] %v281_v61 }
 0x222   :  { %441 = shalt.err (!%p438_p0)
}
 0x223   :  { %s442_s16 = scalar_lea.hbm %s573_s6, 256 }
 0x224   :  { %p443_p1 = scmp.ne.s32.totalorder %s573_s6, %s442_s16  ;;  %p446_p2 = scmp.lt.u32.totalorder %s442_s16, %s573_s6 }
 0x226   :  { %p448_p3 = pnand %p446_p2, %p443_p1 }
 0x228   :  { %451 = shalt.err (!%p448_p3)
}
 0x229   :  { %s468_s1 = smov 128   ;;  %s469_s21 = smov 8  }
 0x22a   :  { %295 = dma.vmem_to_hbm [thread:$0]  %s290_s14, 256, %s573_s6, [#allocation7], %s468_s1, %s468_s1, %s469_s21  }
 0x22b   :  { %458 = dma.done.wait [#allocation7], 256  }
 0x22c   :  { %459 = vsyncadd [#allocation7], 4294967040 }
 0x22d   :  { %299 = vsyncpa [#allocation6], 1 }
 0x22e   :  { %300 = vsyncpa [#allocation9], 1 }
 0x22f   :  { %301 = vsyncpa [#allocation7], 1 }
 0x230   :  { %302 = vsyncmov [#allocation4] }
 0x233   :  { %s303_s24 = vpop.sfrf %302 }
 0x234   :  { %p317_p4 = scmp.ne.s32.totalorder %s303_s24, 0 }
 0x236   :  { %307 = shalt.err (%p317_p4)  }

</bundles_post_ra>
